<compile_context>
chip_gen: v7x
topology: tpu7x:2x2x1
jax: 0.10.0
libtpu: 0.0.40
codegen_flags: <defaults>
</compile_context>

<pallas_src>
import functools

import jax
import jax.numpy as jnp
from jax.experimental import pallas as pl
from jax.experimental.pallas import tpu as pltpu


def _round_up(x, m):
    return (x + m - 1) // m * m


def encoder_kernel(x_ref, w1_ref, b1_ref, w2_ref, b2_ref, mu_ref, sig_ref, *, l_pad):
    # Layer 1: hidden = tanh(x @ W1 + b1).  MXU matmul with f32 accumulation,
    # bias add and tanh in f32 (tanh goes to the EUP slot).
    h = jnp.tanh(
        jnp.dot(x_ref[...], w1_ref[...], preferred_element_type=jnp.float32)
        + b1_ref[...]
    )
    # Layer 2, fused heads: y[:, :l_pad] = mu logits, y[:, l_pad:] = log sigma^2.
    y = (
        jnp.dot(h.astype(w2_ref.dtype), w2_ref[...],
                preferred_element_type=jnp.float32)
        + b2_ref[...]
    )
    # Static lane-tile split (l_pad is a multiple of 128): mu passes through,
    # exp runs only on the sigma lane-tile.  Both stores are lane-dense.
    mu_ref[...] = y[:, :l_pad].astype(mu_ref.dtype)
    sig_ref[...] = jnp.exp(y[:, l_pad:]).astype(sig_ref.dtype)


def prepare_encoder_params(params, *, matmul_dtype=jnp.bfloat16):
    """One-time parameter prep (call OUTSIDE the jitted forward).

    Fuses the mu / sigma heads into one lane-dense [H, 2*Lp] weight (mu in
    lanes [0, Lp), sigma in [Lp, 2*Lp), zero padding elsewhere) and casts the
    MXU inputs to `matmul_dtype`.  Biases stay f32 (added after f32 accum).
    Returns (w1, b1, w2_fused, b2_fused).
    """
    w1, b1, w2m, b2m, w2s, b2s = params
    H = w1.shape[1]
    L = w2m.shape[1]
    l_pad = max(128, _round_up(L, 128))
    w2 = (
        jnp.zeros((H, 2 * l_pad), jnp.float32)
        .at[:, :L].set(w2m)
        .at[:, l_pad:l_pad + L].set(w2s)
    )
    b2 = (
        jnp.zeros((1, 2 * l_pad), jnp.float32)
        .at[:, :L].set(b2m)
        .at[:, l_pad:l_pad + L].set(b2s)
    )
    return (w1.astype(matmul_dtype), b1, w2.astype(matmul_dtype), b2)


def encoder_forward(x, prepared, *, latent, block_b=256, out_dtype=jnp.float32):
    """x: [B, data_dim] f32, prepared = prepare_encoder_params(...).
    Returns (mu, sigma_square), each [B, latent]."""
    w1, b1, w2, b2 = prepared
    B, D = x.shape
    H = w1.shape[1]
    n2 = w2.shape[1]
    l_pad = n2 // 2
    mm_dtype = w1.dtype

    x_mm = x.astype(mm_dtype)

    # ---- Adaptive batch tiling: bound padding to < 8 rows and give the
    # "parallel" batch axis >= 2 grid steps when B allows (v7x: 2 TCs).
    n_tiles = max(pl.cdiv(B, block_b), min(2, pl.cdiv(B, 8)))
    tb = _round_up(pl.cdiv(B, n_tiles), 8)
    b_pad = _round_up(B, tb)
    if b_pad != B:
        x_mm = jnp.pad(x_mm, ((0, b_pad - B), (0, 0)))
    grid = (b_pad // tb,)

    mm_bytes = jnp.dtype(mm_dtype).itemsize
    out_bytes = jnp.dtype(out_dtype).itemsize

    # VMEM footprint: streamed x tile + two output tiles double-buffered,
    # resident weights/biases single-buffered (pl.Buffered(1)).
    vmem_bytes = (
        2 * tb * D * mm_bytes
        + (D * H + H * n2) * mm_bytes
        + (H + n2) * 4
        + 2 * 2 * tb * l_pad * out_bytes
    )
    vmem_limit = min(100 * 1024 * 1024, max(16 * 1024 * 1024, 4 * int(vmem_bytes)))

    flops = 2 * b_pad * D * H + 2 * b_pad * H * n2
    transcendentals = b_pad * H + b_pad * l_pad        # tanh + exp (sigma tile only)
    bytes_accessed = (
        mm_bytes * (b_pad * D + D * H + H * n2)
        + 4 * (H + n2)
        + out_bytes * 2 * b_pad * l_pad
    )

    kernel = functools.partial(encoder_kernel, l_pad=l_pad)
    resident = lambda i: (0, 0)

    mu_pad, sig_pad = pl.pallas_call(
        kernel,
        out_shape=(
            jax.ShapeDtypeStruct((b_pad, l_pad), out_dtype),
            jax.ShapeDtypeStruct((b_pad, l_pad), out_dtype),
        ),
        grid=grid,
        in_specs=[
            pl.BlockSpec((tb, D), lambda i: (i, 0)),                        # x tile (pipelined)
            pl.BlockSpec((D, H), resident, pipeline_mode=pl.Buffered(1)),   # W1 (resident)
            pl.BlockSpec((1, H), resident, pipeline_mode=pl.Buffered(1)),   # b1 (resident)
            pl.BlockSpec((H, n2), resident, pipeline_mode=pl.Buffered(1)),  # W2 fused (resident)
            pl.BlockSpec((1, n2), resident, pipeline_mode=pl.Buffered(1)),  # b2 fused (resident)
        ],
        out_specs=(
            pl.BlockSpec((tb, l_pad), lambda i: (i, 0)),   # mu slab (lane-dense)
            pl.BlockSpec((tb, l_pad), lambda i: (i, 0)),   # sigma^2 slab (lane-dense)
        ),
        compiler_params=pltpu.CompilerParams(
            dimension_semantics=("parallel",),
            vmem_limit_bytes=vmem_limit,
        ),
        cost_estimate=pl.CostEstimate(
            flops=flops,
            transcendentals=transcendentals,
            bytes_accessed=bytes_accessed,
        ),
    )(x_mm, w1, b1, w2, b2)

    mu = mu_pad[:B, :latent]
    sigma_square = sig_pad[:B, :latent]
    return mu, sigma_square


def init_encoder_params(key, data_dimension, hidden_units, latent_dimension):
    """Deterministic init mimicking nn.Linear (uniform +-1/sqrt(fan_in)).
    Weights stored already transposed: [in_features, out_features]."""
    ks = jax.random.split(key, 6)

    def linear(kw, kb, fan_in, fan_out):
        bound = 1.0 / jnp.sqrt(fan_in)
        w = jax.random.uniform(kw, (fan_in, fan_out), jnp.float32, -bound, bound)
        b = jax.random.uniform(kb, (1, fan_out), jnp.float32, -bound, bound)
        return w, b

    w1, b1 = linear(ks[0], ks[1], data_dimension, hidden_units)
    w2m, b2m = linear(ks[2], ks[3], hidden_units, latent_dimension)
    w2s, b2s = linear(ks[4], ks[5], hidden_units, latent_dimension)
    return (w1, b1, w2m, b2m, w2s, b2s)


if __name__ == "__main__":
    # Small shapes consistent with the module's forward:
    # batch=8, data_dimension=32, hidden_units=32, latent_dimension=8
    B, DATA_DIM, HIDDEN, LATENT = 8, 32, 32, 8

    key = jax.random.PRNGKey(0)
    k_x, k_p = jax.random.split(key)
    x = jax.random.normal(k_x, (B, DATA_DIM), dtype=jnp.float32)
    params = init_encoder_params(k_p, DATA_DIM, HIDDEN, LATENT)

    # Pure-JAX reference
    w1, b1, w2m, b2m, w2s, b2s = params
    h_ref = jnp.tanh(x @ w1 + b1)
    mu_ref = h_ref @ w2m + b2m
    sig_ref = jnp.exp(h_ref @ w2s + b2s)

    # --- Default path: bf16 MXU inputs (f32 accumulation / tanh / exp). ---
    prep_bf16 = prepare_encoder_params(params, matmul_dtype=jnp.bfloat16)
    fwd = jax.jit(functools.partial(encoder_forward, latent=LATENT))
    mu, sigma_square = fwd(x, prep_bf16)
    jax.block_until_ready((mu, sigma_square))
    assert mu.shape == (B, LATENT) and sigma_square.shape == (B, LATENT)
    assert jnp.allclose(mu, mu_ref, atol=2e-2, rtol=2e-2), "mu mismatch (bf16)"
    assert jnp.allclose(sigma_square, sig_ref, atol=2e-2, rtol=2e-2), \
        "sigma_square mismatch (bf16)"

    # --- f32 matmul path: tight reference check. ---
    prep_f32 = prepare_encoder_params(params, matmul_dtype=jnp.float32)
    mu32, sig32 = fwd(x, prep_f32)
    jax.block_until_ready((mu32, sig32))
    assert jnp.allclose(mu32, mu_ref, atol=1e-5), "mu mismatch (f32)"
    assert jnp.allclose(sig32, sig_ref, atol=1e-5), "sigma_square mismatch (f32)"

    print("KERNEL_OK")
</pallas_src>

<mosaic_0001>
module attributes {stable_mosaic.version = 11 : i64} {
  func.func @encoder_kernel(%arg0: i32, %arg1: memref<8x32xbf16, #tpu.memory_space<vmem>>, %arg2: memref<32x32xbf16, #tpu.memory_space<vmem>>, %arg3: memref<1x32xf32, #tpu.memory_space<vmem>>, %arg4: memref<32x256xbf16, #tpu.memory_space<vmem>>, %arg5: memref<1x256xf32, #tpu.memory_space<vmem>>, %arg6: memref<8x128xf32, #tpu.memory_space<vmem>>, %arg7: memref<8x128xf32, #tpu.memory_space<vmem>>) attributes {dimension_semantics = [#tpu.dimension_semantics<parallel>], iteration_bounds = array<i64: 1>, scalar_prefetch = 0 : i64, scratch_operands = 0 : i64, tpu.core_type = #tpu.core_type<tc>, window_params = [{transform_indices = @transform_0, window_bounds = array<i64: 8, 32>}, {pipeline_mode = #tpu.pipeline_mode<synchronous>, transform_indices = @transform_1, window_bounds = array<i64: 32, 32>}, {pipeline_mode = #tpu.pipeline_mode<synchronous>, transform_indices = @transform_2, window_bounds = array<i64: 1, 32>}, {pipeline_mode = #tpu.pipeline_mode<synchronous>, transform_indices = @transform_3, window_bounds = array<i64: 32, 256>}, {pipeline_mode = #tpu.pipeline_mode<synchronous>, transform_indices = @transform_4, window_bounds = array<i64: 1, 256>}, {transform_indices = @transform_5, window_bounds = array<i64: 8, 128>}, {transform_indices = @transform_6, window_bounds = array<i64: 8, 128>}]} {
    %c0 = arith.constant 0 : index
    %c0_0 = arith.constant 0 : index
    %0 = vector.load %arg1[%c0, %c0_0] : memref<8x32xbf16, #tpu.memory_space<vmem>>, vector<8x32xbf16>
    %c0_1 = arith.constant 0 : index
    %c0_2 = arith.constant 0 : index
    %1 = vector.load %arg2[%c0_1, %c0_2] : memref<32x32xbf16, #tpu.memory_space<vmem>>, vector<32x32xbf16>
    %cst = arith.constant dense<0.000000e+00> : vector<8x32xf32>
    %2 = tpu.matmul %0, %1, %cst {dimension_numbers = #tpu.dot_dimension_numbers<[1], [0], [0], [1], [0, 0, 1, 1], [], []>} : vector<8x32xbf16>, vector<32x32xbf16>, vector<8x32xf32> -> vector<8x32xf32>
    %c0_3 = arith.constant 0 : index
    %c0_4 = arith.constant 0 : index
    %3 = vector.load %arg3[%c0_3, %c0_4] : memref<1x32xf32, #tpu.memory_space<vmem>>, vector<1x32xf32>
    %4 = vector.broadcast %3 : vector<1x32xf32> to vector<8x32xf32>
    %5 = arith.addf %2, %4 : vector<8x32xf32>
    %6 = math.tanh %5 : vector<8x32xf32>
    %7 = arith.truncf %6 : vector<8x32xf32> to vector<8x32xbf16>
    %c0_5 = arith.constant 0 : index
    %c0_6 = arith.constant 0 : index
    %8 = vector.load %arg4[%c0_5, %c0_6] : memref<32x256xbf16, #tpu.memory_space<vmem>>, vector<32x256xbf16>
    %cst_7 = arith.constant dense<0.000000e+00> : vector<8x256xf32>
    %9 = tpu.matmul %7, %8, %cst_7 {dimension_numbers = #tpu.dot_dimension_numbers<[1], [0], [0], [1], [0, 0, 1, 1], [], []>} : vector<8x32xbf16>, vector<32x256xbf16>, vector<8x256xf32> -> vector<8x256xf32>
    %c0_8 = arith.constant 0 : index
    %c0_9 = arith.constant 0 : index
    %10 = vector.load %arg5[%c0_8, %c0_9] : memref<1x256xf32, #tpu.memory_space<vmem>>, vector<1x256xf32>
    %11 = vector.broadcast %10 : vector<1x256xf32> to vector<8x256xf32>
    %12 = arith.addf %9, %11 : vector<8x256xf32>
    %13 = vector.extract_strided_slice %12 {offsets = [0, 0], sizes = [8, 128], strides = [1, 1]} : vector<8x256xf32> to vector<8x128xf32>
    %c0_10 = arith.constant 0 : index
    %c0_11 = arith.constant 0 : index
    %14 = vector.load %arg6[%c0_10, %c0_11] : memref<8x128xf32, #tpu.memory_space<vmem>>, vector<8x128xf32>
    tpu.vector_store %arg6[%c0_10, %c0_11], %13 {strides = array<i32>} : memref<8x128xf32, #tpu.memory_space<vmem>>, vector<8x128xf32>,
    %15 = vector.extract_strided_slice %12 {offsets = [0, 128], sizes = [8, 128], strides = [1, 1]} : vector<8x256xf32> to vector<8x128xf32>
    %16 = math.exp %15 : vector<8x128xf32>
    %c0_12 = arith.constant 0 : index
    %c0_13 = arith.constant 0 : index
    %17 = vector.load %arg7[%c0_12, %c0_13] : memref<8x128xf32, #tpu.memory_space<vmem>>, vector<8x128xf32>
    tpu.vector_store %arg7[%c0_12, %c0_13], %16 {strides = array<i32>} : memref<8x128xf32, #tpu.memory_space<vmem>>, vector<8x128xf32>,
    return
  }
  func.func @transform_0(%arg0: i32) -> (i32, i32) {
    %c0_i32 = arith.constant 0 : i32
    %c0_i32_0 = arith.constant 0 : i32
    return %arg0, %c0_i32 : i32, i32
  }
  func.func @transform_1(%arg0: i32) -> (i32, i32) {
    %c0_i32 = arith.constant 0 : i32
    %c0_i32_0 = arith.constant 0 : i32
    %c0_i32_1 = arith.constant 0 : i32
    return %c0_i32, %c0_i32_0 : i32, i32
  }
  func.func @transform_2(%arg0: i32) -> (i32, i32) {
    %c0_i32 = arith.constant 0 : i32
    %c0_i32_0 = arith.constant 0 : i32
    %c0_i32_1 = arith.constant 0 : i32
    return %c0_i32, %c0_i32_0 : i32, i32
  }
  func.func @transform_3(%arg0: i32) -> (i32, i32) {
    %c0_i32 = arith.constant 0 : i32
    %c0_i32_0 = arith.constant 0 : i32
    %c0_i32_1 = arith.constant 0 : i32
    return %c0_i32, %c0_i32_0 : i32, i32
  }
  func.func @transform_4(%arg0: i32) -> (i32, i32) {
    %c0_i32 = arith.constant 0 : i32
    %c0_i32_0 = arith.constant 0 : i32
    %c0_i32_1 = arith.constant 0 : i32
    return %c0_i32, %c0_i32_0 : i32, i32
  }
  func.func @transform_5(%arg0: i32) -> (i32, i32) {
    %c0_i32 = arith.constant 0 : i32
    %c0_i32_0 = arith.constant 0 : i32
    return %arg0, %c0_i32 : i32, i32
  }
  func.func @transform_6(%arg0: i32) -> (i32, i32) {
    %c0_i32 = arith.constant 0 : i32
    %c0_i32_0 = arith.constant 0 : i32
    return %arg0, %c0_i32 : i32, i32
  }
}

</mosaic_0001>

<bundles_post_ra>
// kernel: encoder_forward.1
= control target key start
LH: loop header
LB: loop body
LE: loop exit
PB: predicated region body
PF: predicated region fallthrough
CT: control target
= control target key end

     0   :  { %12 = vsyncpa [#allocation3], 0  ;;  %s481_s0 = inlined_call_operand.vmem [shape: bf16[8,32], index: 0, kind: input, shape index: {}]   ;;  %s482_s1 = inlined_call_operand.hbm [shape: bf16[32,32], index: 1, kind: input, shape index: {}]   ;;  %s483_s2 = inlined_call_operand.vmem [shape: f32[1,32], index: 2, kind: input, shape index: {}]   ;;  %s484_s3 = inlined_call_operand.hbm [shape: bf16[32,256], index: 3, kind: input, shape index: {}]   ;;  %s485_s4 = inlined_call_operand.vmem [shape: f32[1,256], index: 4, kind: input, shape index: {}]   ;;  %s486_s5 = inlined_call_operand.hbm [shape: f32[8,128], index: 5, kind: output, shape index: {0}]   ;;  %s487_s6 = inlined_call_operand.hbm [shape: f32[8,128], index: 6, kind: output, shape index: {1}]  }
   0x1   :  { %13 = vsyncpa [#allocation6], 0 }
   0x2   :  { %14 = vsyncpa [#allocation4], 0 }
   0x3   :  { %15 = vsyncpa [#allocation9], 0  ;;  %s376_s21 = smov [#allocation2]   ;;  %s280_s25 = scalar_lea.hbm %s482_s1, 256 }
   0x4   :  { %s23_s22 = sshll.u32 %s376_s21, 4  ;;  %p281_p0 = scmp.ne.s32.totalorder %s482_s1, %s280_s25  ;;  %s24_s22 = int_to_ptr.vmem [resolvable:$true] %s23_s22 }
   0x5   :  { %p284_p1 = scmp.lt.u32.totalorder %s280_s25, %s482_s1 }
   0x7   :  { %p286_p2 = pnand %p284_p1, %p281_p0 }
   0x9   :  { %289 = shalt.err (!%p286_p2)
}
   0xa   :  { %s290_s30 = scalar_lea.vmem %s24_s22, 256  ;;  %p295_p4 = scmp.lt.s32.totalorder %s24_s22, %s24_s22 }
   0xb   :  { %p291_p3 = scmp.ne.s32.totalorder %s24_s22, %s290_s30  ;;  %p296_p5 = scmp.lt.s32.totalorder %s290_s30, %s290_s30 }
   0xd   :  { %p297_p6 = por %p296_p5, %p295_p4 }
   0xf   :  { %p298_p7 = pnand %p297_p6, %p291_p3 }
  0x11   :  { %301 = shalt.err (!%p298_p7)
}
  0x12   :  { %s377_s7 = smov 64   ;;  %s378_s8 = smov 4  }
  0x13   :  { %29 = dma.hbm_to_vmem [thread:$0]  %s482_s1, 256, %s24_s22, [#allocation3], %s377_s7, %s377_s7, %s378_s8  }
  0x14   :  { %s379_s11 = smov [#allocation5]   ;;  %s302_s15 = scalar_lea.hbm %s484_s3, 512 }
  0x15   :  { %s37_s12 = sshll.u32 %s379_s11, 4  ;;  %p303_p8 = scmp.ne.s32.totalorder %s484_s3, %s302_s15  ;;  %s38_s12 = int_to_ptr.vmem [resolvable:$true] %s37_s12 }
  0x16   :  { %p306_p9 = scmp.lt.u32.totalorder %s302_s15, %s484_s3 }
  0x18   :  { %p308_p10 = pnand %p306_p9, %p303_p8 }
  0x1a   :  { %311 = shalt.err (!%p308_p10)
}
  0x1b   :  { %s312_s20 = scalar_lea.vmem %s38_s12, 512  ;;  %p317_p12 = scmp.lt.s32.totalorder %s38_s12, %s38_s12 }
  0x1c   :  { %p313_p11 = scmp.ne.s32.totalorder %s38_s12, %s312_s20  ;;  %p318_p13 = scmp.lt.s32.totalorder %s312_s20, %s312_s20 }
  0x1e   :  { %p319_p0 = por %p318_p13, %p317_p12 }
  0x20   :  { %p320_p1 = pnand %p319_p0, %p313_p11 }
  0x22   :  { %323 = shalt.err (!%p320_p1)
}
  0x23   :  { %s380_s1 = smov 128   ;;  %s381_s21 = smov 8  }
  0x24   :  { %43 = dma.hbm_to_vmem [thread:$0]  %s484_s3, 512, %s38_s12, [#allocation6], %s380_s1, %s380_s1, %s381_s21  }
  0x25   :  { %368 = dma.done.wait [#allocation3], 256  }
  0x26   :  { %369 = vsyncadd [#allocation3], 4294967040 }
  0x27   :  { %370 = dma.done.wait [#allocation6], 512  }
  0x28   :  { %371 = vsyncadd [#allocation6], 4294966784  ;;  %v382_v0 = vmov 0.0   ;;  %vm383_vm0 = vmmov 0   ;;  %v268_v1 = vld [vmem:[#allocation2] sm:$0xff]   ;;  %v269_v2 = vld [vmem:[#allocation2 + $0x8] sm:$0xff]   ;;  %v129_v17 = vlaneseq }
  0x29   :  { %249 = vmatprep.subr.bf16.mxu0 %v382_v0  ;;  %253 = vmatprep.mubr.msk.bf16.mxu0 %vm383_vm0, %v382_v0  ;;  %v53_v3 = vld [vmem:[%s481_s0] sm:$0xf]  ;;  %vm77_vm1 = vcmask 261120   ;;  %v270_v4 = vld [vmem:[#allocation5 + $0x4] ss:$8 sps:$4 sm:$0xff]   ;;  %v384_v8 = vmov 0  }
  0x2a   :  { %250 = vmatpush3.bf16.msra.mxu0 %v268_v1  ;;  %v272_v5 = vld [vmem:[#allocation5] ss:$8 sps:$4 sm:$0xff]   ;;  %162 = vmatprep.subr.bf16.mxu1 %v270_v4  ;;  %v273_v6 = vld [vmem:[#allocation5 + $0x14] ss:$8 sps:$4 sm:$0xff]   ;;  %v275_v7 = vld [vmem:[#allocation5 + $0x10] ss:$8 sps:$4 sm:$0xff]  }
  0x2b   :  { %251 = vmatprep.subr.bf16.mxu0 %v382_v0  ;;  %163 = vmatpush1.bf16.msra.mxu1 %v272_v5  ;;  %v237_v9 = vld [vmem:[%s483_s2] ss:$0 sm:$0xff]  ;;  %v130_v18 = vshrl.u32 %v129_v17, 7  ;;  %s385_s2 = smov [#allocation7]  }
  0x2c   :  { %164 = vmatprep.subr.bf16.mxu1 %v273_v6  ;;  %194 = vmatprep.mubr.bf16.mxu1 %v384_v8  ;;  %v127_v20 = vld [vmem:[%s485_s4] sm:$0x3]  ;;  %s213_s28 = sshll.u32 %s385_s2, 4  ;;  %s214_s28 = int_to_ptr.vmem [resolvable:$true] %s213_s28 }
  0x2d   :  { %v131_v19 = vsub.s32 0, %v130_v18  ;;  %v135_v21 = vsub.s32 1, %v130_v18  ;;  %s324_s29 = scalar_lea.vmem %s214_s28, 128  ;;  %p329_p3 = scmp.lt.s32.totalorder %s214_s28, %s214_s28 }
  0x2e   :  { %252 = vmatpush3.bf16.msra.mxu0 %v269_v2  ;;  %p325_p2 = scmp.ne.s32.totalorder %s214_s28, %s324_s29  ;;  %p330_p4 = scmp.lt.s32.totalorder %s324_s29, %s324_s29 }
  0x2f   :  { %165 = vmatpush1.bf16.msra.mxu1 %v275_v7  ;;  %v132_v22 = vrot.slane %v127_v20, %v131_v19  ;;  %v136_v23 = vrot.slane %v127_v20, %v135_v21 }
  0x30   :  { %p331_p5 = por %p330_p4, %p329_p3 }
  0x31   :  { %254 = vmatmul.mubr.msk.bf16.vlgmr.msra.gmra.mrb[0].mxu0 %vm77_vm1, %v53_v3 }
  0x32   :  { %p332_p6 = pnand %p331_p5, %p325_p2 }
 0x104   :  { %v115_v10 = vpop.f32.mrb[0].mxu0 }
 0x105   :  { %v116_v11 = vadd.f32 %v237_v9, %v115_v10  ;;  %v255_v12 = vpop.f32.mrb[1].mxu0 }
 0x106   :  { %v118_v13 = vpop.f32.mrb[2].mxu0 }
 0x107   :  { %276 = vtanh.f32 %v116_v11  ;;  %v256_v14 = vpop.f32.mrb[3].mxu0 }
 0x111   :  { %v277_v15 = vpop.eup %276 }
 0x112   :  { %v122_v16 = vpack.c.bf16 %v277_v15, %v277_v15 }
 0x114   :  { %245 = vmatmul.mubr.msk.bf16.vlgmr.msra.gmra.mrb[0].mxu1 %vm77_vm1, %v122_v16 }
 0x1e7   :  { %v196_v24 = vpop.f32.mrb[0].mxu1 }
 0x1e8   :  { %v197_v25 = vadd.f32 %v196_v24, %v132_v22  ;;  %v198_v26 = vpop.f32.mrb[1].mxu1 }
 0x1e9   :  { %v199_v27 = vadd.f32 %v198_v26, %v136_v23  ;;  %v200_v28 = vpop.f32.mrb[2].mxu1 }
 0x1ea   :  { %203 = vst [vmem:[#allocation7] sm:$0xff] %v197_v25  ;;  %v201_v29 = vpop.f32.mrb[3].mxu1 }
 0x1eb   :  { %v204_v30 = vmul.f32 1.442695, %v199_v27 }
 0x1ec   :  { %335 = shalt.err (!%p332_p6)
}
 0x1ed   :  { %s336_s7 = scalar_lea.hbm %s486_s5, 128 }
 0x1ee   :  { %p337_p7 = scmp.ne.s32.totalorder %s486_s5, %s336_s7  ;;  %p340_p8 = scmp.lt.u32.totalorder %s336_s7, %s486_s5 }
 0x1f0   :  { %p342_p9 = pnand %p340_p8, %p337_p7 }
 0x1f2   :  { %345 = shalt.err (!%p342_p9)
}
 0x1f3   :  { %216 = dma.vmem_to_hbm [thread:$0]  %s214_s28, 128, %s486_s5, [#allocation4]   ;;  %278 = vpow2.f32 %v204_v30 }
 0x1f4   :  { %s386_s14 = smov [#allocation8]  }
 0x1f5   :  { %s223_s15 = sshll.u32 %s386_s14, 4  ;;  %s224_s15 = int_to_ptr.vmem [resolvable:$true] %s223_s15 }
 0x1f6   :  { %s346_s16 = scalar_lea.vmem %s224_s15, 128  ;;  %p351_p11 = scmp.lt.s32.totalorder %s224_s15, %s224_s15 }
 0x1f7   :  { %p347_p10 = scmp.ne.s32.totalorder %s224_s15, %s346_s16  ;;  %p352_p12 = scmp.lt.s32.totalorder %s346_s16, %s346_s16 }
 0x1f9   :  { %p353_p13 = por %p352_p12, %p351_p11 }
 0x1fb   :  { %p354_p0 = pnand %p353_p13, %p347_p10 }
 0x1fd   :  { %v279_v31 = vpop.eup %278 }
 0x1fe   :  { %206 = vst [vmem:[#allocation8] sm:$0xff] %v279_v31 }
 0x1ff   :  { %357 = shalt.err (!%p354_p0)
}
 0x200   :  { %s358_s19 = scalar_lea.hbm %s487_s6, 128 }
 0x201   :  { %p359_p1 = scmp.ne.s32.totalorder %s487_s6, %s358_s19  ;;  %p362_p2 = scmp.lt.u32.totalorder %s358_s19, %s487_s6 }
 0x203   :  { %p364_p3 = pnand %p362_p2, %p359_p1 }
 0x205   :  { %367 = shalt.err (!%p364_p3)
}
 0x206   :  { %226 = dma.vmem_to_hbm [thread:$0]  %s224_s15, 128, %s487_s6, [#allocation9]  }
 0x207   :  { %372 = dma.done.wait [#allocation4], 128  }
 0x208   :  { %373 = vsyncadd [#allocation4], 4294967168 }
 0x209   :  { %374 = dma.done.wait [#allocation9], 128  }
 0x20a   :  { %375 = vsyncadd [#allocation9], 4294967168 }
 0x20b   :  { %233 = vsyncpa [#allocation3], 1 }
 0x20c   :  { %234 = vsyncpa [#allocation6], 1 }
 0x20d   :  { %235 = vsyncpa [#allocation4], 1 }
 0x20e   :  { %236 = vsyncpa [#allocation9], 1 }

</bundles_post_ra>
